<compile_context>
chip_gen: v7x
topology: tpu7x:2x2x1
jax: 0.10.0
libtpu: 0.0.40
codegen_flags: <defaults>
</compile_context>

<pallas_src>
import functools

import numpy as np
import jax
import jax.numpy as jnp
from jax.experimental import pallas as pl
from jax.experimental.pallas import tpu as pltpu


_HALO = 128  # lane columns of look-ahead read from the next tile (must be >= R - 1)


def _round_up(x, m):
    return ((x + m - 1) // m) * m


# ----------------------------------------------------------------------------
# Parameter construction (deterministic analytic Fourier bases — no checkpoint)
# ----------------------------------------------------------------------------
def compute_valid_basis(hidden_channels, onesided=True, return_complex=True):
    assert onesided and return_complex
    return 2 * hidden_channels


def build_fourier_bases(hidden_channels, kernel_size, stride, window_fn="hann"):
    """enc, dec: (2F, K) analysis / WOLA-synthesis bases (conv1d / conv_transpose1d weights)."""
    K, S = kernel_size, stride
    assert K % S == 0, "kernel_size is expected divisible by stride"
    F_bins = K // 2 + 1
    assert hidden_channels == F_bins, "hidden_channels must equal kernel_size//2 + 1"

    n = np.arange(K, dtype=np.float64)
    if window_fn == "hann":
        w = 0.5 - 0.5 * np.cos(2.0 * np.pi * n / K)  # periodic hann
    else:
        w = np.ones((K,), dtype=np.float64)

    k = np.arange(F_bins, dtype=np.float64)
    ang = 2.0 * np.pi * k[:, None] * n[None, :] / K
    norm = 1.0 / np.sqrt(float(K))
    cos_b = np.cos(ang) * norm
    sin_b = np.sin(ang) * norm

    enc = np.concatenate([cos_b * w, -sin_b * w], axis=0)           # (2F, K)

    R = K // S
    denom = np.zeros((K,), dtype=np.float64)
    for r in range(R):
        denom += np.roll(w * w, r * S)
    w_syn = w / denom                                               # optimal (WOLA) window

    k_int = np.arange(F_bins)
    c = np.where((k_int == 0) | (2 * k_int == K), 1.0, 2.0) / np.sqrt(float(K))
    dec = np.concatenate(
        [c[:, None] * np.cos(ang) * w_syn, -c[:, None] * np.sin(ang) * w_syn], axis=0
    )                                                               # (2F, K)
    return jnp.asarray(enc, jnp.float32), jnp.asarray(dec, jnp.float32)


def build_kernel_matrices(enc, dec, kernel_size, stride):
    """Pre-arrange the bases for the kernel.

    enc_split  (R, 2F, S): analysis basis, contraction K split into R chunks of S.
    mrec_split (R, K, S):  fused decode matrix P @ (dec^T @ enc), same split; the row
                           permutation P (k = r*S + s -> s*R + r) makes the wrapper-side
                           overlap-add a pure reshape + reduce (no transposes over rec).
    """
    K, S = kernel_size, stride
    R = K // S
    two_f = enc.shape[0]

    m_rec = jnp.transpose(dec) @ enc                                # (K, K)
    order = np.array([(j % R) * S + (j // R) for j in range(K)], dtype=np.int32)
    m_rec = m_rec[order, :]                                         # permuted output rows

    enc_split = jnp.transpose(enc.reshape(two_f, R, S), (1, 0, 2))   # (R, 2F, S)
    mrec_split = jnp.transpose(m_rec.reshape(K, R, S), (1, 0, 2))    # (R, K, S)
    return enc_split.astype(jnp.float32), mrec_split.astype(jnp.float32)


# ----------------------------------------------------------------------------
# Pallas kernel: fused framing + encoder + decoder-synthesis matmuls, lane-dense tiles
# ----------------------------------------------------------------------------
def _make_tasnet_kernel(R, S, tl, two_f):
    K = R * S

    def kernel(xt_ref, halo_ref, enc_ref, mrec_ref, lat_ref, rec_ref):
        cur = xt_ref[0]                                  # (S, tl)   chunk-transposed signal
        nxt = halo_ref[0]                                # (S, HALO) look-ahead columns
        wide = jnp.concatenate([cur, nxt], axis=-1)      # (S, tl + HALO), lane-aligned concat

        lat = jnp.zeros((two_f, tl), jnp.float32)
        rec = jnp.zeros((K, tl), jnp.float32)
        # frames_T[r*S + s, l] = chunk[s, l + r]  ->  accumulate the K contraction over r.
        # Both matmuls read the same shifted windows (no serial MXU dependency).
        for r in range(R):
            blk = wide[:, r:r + tl]                      # (S, tl) shifted frame window
            lat = lat + jnp.dot(enc_ref[r], blk, preferred_element_type=jnp.float32)
            rec = rec + jnp.dot(mrec_ref[r], blk, preferred_element_type=jnp.float32)

        lat_ref[0] = lat                                 # (2F, tl)  lane-dense store
        rec_ref[0] = rec                                 # (K, tl)   lane-dense store

    return kernel


def _encode_decode(xt_pad, enc_split, mrec_split, *, R, S, tl, n_tiles):
    B = xt_pad.shape[0]
    K = R * S
    two_f = enc_split.shape[1]
    L_pad = n_tiles * tl
    halo_blocks = tl // _HALO

    kern = _make_tasnet_kernel(R, S, tl, two_f)
    latent_t, rec_t = pl.pallas_call(
        kern,
        out_shape=(
            jax.ShapeDtypeStruct((B, two_f, L_pad), jnp.float32),
            jax.ShapeDtypeStruct((B, K, L_pad), jnp.float32),
        ),
        grid_spec=pltpu.PrefetchScalarGridSpec(
            num_scalar_prefetch=0,
            grid=(B, n_tiles),
            in_specs=[
                pl.BlockSpec((1, S, tl), lambda b, j: (b, 0, j)),                       # tile
                pl.BlockSpec((1, S, _HALO), lambda b, j: (b, 0, (j + 1) * halo_blocks)),  # halo
                pl.BlockSpec((R, two_f, S), lambda b, j: (0, 0, 0)),                    # enc
                pl.BlockSpec((R, K, S), lambda b, j: (0, 0, 0)),                        # dec^T@enc
            ],
            out_specs=[
                pl.BlockSpec((1, two_f, tl), lambda b, j: (b, 0, j)),
                pl.BlockSpec((1, K, tl), lambda b, j: (b, 0, j)),
            ],
        ),
        compiler_params=pltpu.CompilerParams(
            dimension_semantics=("parallel", "parallel"),
        ),
    )(xt_pad, xt_pad, enc_split, mrec_split)
    return latent_t, rec_t


# ----------------------------------------------------------------------------
# TasNetBase forward (glue: pad, chunk-transpose, single-pass overlap-add, crop)
# ----------------------------------------------------------------------------
@functools.partial(jax.jit, static_argnames=("kernel_size", "stride", "tile_l"))
def tasnet_base_forward(x, enc_split, mrec_split, *, kernel_size, stride, tile_l=512):
    B, C_in, T = x.shape
    assert C_in == 1, f"input is expected (?, 1, ?), got {x.shape}"
    K, S = kernel_size, stride
    R = K // S
    assert T >= K, "signal must be at least kernel_size samples long"
    assert R - 1 <= _HALO

    padding = (S - (T - K) % S) % S
    pad_l = padding // 2
    pad_r = padding - pad_l
    T_pad = T + padding
    L = (T_pad - K) // S + 1
    N = L + R - 1                                        # T_pad == N * S

    tl = max(128, min(_round_up(tile_l, 128), _round_up(L, 128)))
    n_tiles = pl.cdiv(L, tl)
    n_cols = (n_tiles + 1) * tl                          # room for the last tile's halo

    # chunk-transpose the padded signal: xt[b, s, n] = x_padded[b, n*S + s]
    xp = jnp.pad(x[:, 0, :], ((0, 0), (pad_l, pad_r)))
    xt = jnp.transpose(xp.reshape(B, N, S), (0, 2, 1))
    xt_pad = jnp.pad(xt, ((0, 0), (0, 0), (0, n_cols - N)))

    latent_t, rec_t = _encode_decode(
        xt_pad, enc_split, mrec_split, R=R, S=S, tl=tl, n_tiles=n_tiles
    )

    latent = latent_t[:, :, :L]                          # (B, 2F, L) — conv1d layout

    # overlap-add (conv_transpose1d, hop S) as ONE reshape+reduce (skew trick);
    # the kernel already emitted rec rows in (s*R + r) order.
    rec = rec_t[:, :, :L].reshape(B, S, R, L)
    rec = jnp.pad(rec, ((0, 0), (0, 0), (0, 0), (0, R)))
    rec = rec.reshape(B, S, R * (L + R))[:, :, : R * (L + R - 1)]
    rec = rec.reshape(B, S, R, L + R - 1)
    chunks_t = jnp.sum(rec, axis=2)                      # (B, S, N)
    out_pad = jnp.transpose(chunks_t, (0, 2, 1)).reshape(B, T_pad)

    out = out_pad[:, pad_l:T_pad - pad_r]                # F.pad with negative pads
    return out[:, None, :], latent


# ----------------------------------------------------------------------------
# Pure-JAX reference (straightforward conv1d framing + conv_transpose OLA)
# ----------------------------------------------------------------------------
@functools.partial(jax.jit, static_argnames=("kernel_size", "stride"))
def tasnet_base_reference(x, enc, dec, *, kernel_size, stride):
    B, _, T = x.shape
    K, S = kernel_size, stride
    R = K // S
    padding = (S - (T - K) % S) % S
    pad_l = padding // 2
    pad_r = padding - pad_l
    T_pad = T + padding
    L = (T_pad - K) // S + 1

    xp = jnp.pad(x[:, 0, :], ((0, 0), (pad_l, pad_r)))
    idx = jnp.arange(L)[:, None] * S + jnp.arange(K)[None, :]
    frames = xp[:, idx]                                  # (B, L, K)
    latent = jnp.einsum("blk,ck->bcl", frames, enc)      # (B, 2F, L)
    rec = jnp.einsum("bcl,ck->blk", latent, dec)         # (B, L, K)

    rec = rec.reshape(B, L, R, S)
    chunks = jnp.zeros((B, L + R - 1, S), dtype=x.dtype)
    for r in range(R):
        chunks = chunks.at[:, r:r + L, :].add(rec[:, :, r, :])
    out_pad = chunks.reshape(B, T_pad)
    out = out_pad[:, pad_l:T_pad - pad_r]
    return out[:, None, :], latent


# ----------------------------------------------------------------------------
if __name__ == "__main__":
    kernel_size, stride = 16, 4
    hidden_channels = kernel_size // 2 + 1
    n_basis = compute_valid_basis(hidden_channels, onesided=True, return_complex=True)
    assert n_basis == 2 * hidden_channels

    enc, dec = build_fourier_bases(hidden_channels, kernel_size, stride, window_fn="hann")
    enc_split, mrec_split = build_kernel_matrices(enc, dec, kernel_size, stride)

    key = jax.random.PRNGKey(0)
    # small single-tile case + a longer multi-tile case that exercises the halo path
    for (B, T, tile_l) in [(2, 50, 512), (2, 2749, 256)]:
        key, sub = jax.random.split(key)
        x = jax.random.normal(sub, (B, 1, T), dtype=jnp.float32)

        out, latent = tasnet_base_forward(
            x, enc_split, mrec_split, kernel_size=kernel_size, stride=stride, tile_l=tile_l
        )
        out = jax.block_until_ready(out)

        out_ref, latent_ref = tasnet_base_reference(
            x, enc, dec, kernel_size=kernel_size, stride=stride
        )
        assert out.shape == (B, 1, T)
        assert jnp.allclose(out, out_ref, atol=1e-4), "Pallas output mismatch vs JAX reference"
        assert jnp.allclose(latent, latent_ref, atol=1e-4), "Pallas latent mismatch vs JAX reference"

        # STFT/iSTFT WOLA round trip reconstructs the interior exactly (edge taper as in PyTorch)
        interior = slice(kernel_size, T - kernel_size)
        assert jnp.allclose(out[:, 0, interior], x[:, 0, interior], atol=1e-4)

    print("KERNEL_OK")
</pallas_src>

<mosaic_0001>
module attributes {stable_mosaic.version = 11 : i64} {
  func.func @kernel(%arg0: i32, %arg1: i32, %arg2: memref<1x4x128xf32, #tpu.memory_space<vmem>>, %arg3: memref<1x4x128xf32, #tpu.memory_space<vmem>>, %arg4: memref<4x18x4xf32, #tpu.memory_space<vmem>>, %arg5: memref<4x16x4xf32, #tpu.memory_space<vmem>>, %arg6: memref<1x18x128xf32, #tpu.memory_space<vmem>>, %arg7: memref<1x16x128xf32, #tpu.memory_space<vmem>>) attributes {dimension_semantics = [#tpu.dimension_semantics<parallel>, #tpu.dimension_semantics<parallel>], iteration_bounds = array<i64: 2, 1>, scalar_prefetch = 0 : i64, scratch_operands = 0 : i64, tpu.core_type = #tpu.core_type<tc>, window_params = [{transform_indices = @transform_0, window_bounds = array<i64: 1, 4, 128>}, {transform_indices = @transform_1, window_bounds = array<i64: 1, 4, 128>}, {pipeline_mode = #tpu.pipeline_mode<synchronous>, transform_indices = @transform_2, window_bounds = array<i64: 4, 18, 4>}, {pipeline_mode = #tpu.pipeline_mode<synchronous>, transform_indices = @transform_3, window_bounds = array<i64: 4, 16, 4>}, {transform_indices = @transform_4, window_bounds = array<i64: 1, 18, 128>}, {transform_indices = @transform_5, window_bounds = array<i64: 1, 16, 128>}]} {
    %c0 = arith.constant 0 : index
    %c0_0 = arith.constant 0 : index
    %c0_1 = arith.constant 0 : index
    %0 = vector.load %arg2[%c0, %c0_0, %c0_1] : memref<1x4x128xf32, #tpu.memory_space<vmem>>, vector<1x4x128xf32>
    %1 = vector.shape_cast %0 : vector<1x4x128xf32> to vector<4x128xf32>
    %c0_2 = arith.constant 0 : index
    %c0_3 = arith.constant 0 : index
    %c0_4 = arith.constant 0 : index
    %2 = vector.load %arg3[%c0_2, %c0_3, %c0_4] : memref<1x4x128xf32, #tpu.memory_space<vmem>>, vector<1x4x128xf32>
    %3 = vector.shape_cast %2 : vector<1x4x128xf32> to vector<4x128xf32>
    %4 = tpu.concatenate %1, %3 in 1 : vector<4x128xf32>, vector<4x128xf32> -> vector<4x256xf32>
    %cst = arith.constant 0.000000e+00 : f32
    %5 = vector.broadcast %cst : f32 to vector<18x128xf32>
    %cst_5 = arith.constant 0.000000e+00 : f32
    %6 = vector.broadcast %cst_5 : f32 to vector<16x128xf32>
    %7 = vector.extract_strided_slice %4 {offsets = [0, 0], sizes = [4, 128], strides = [1, 1]} : vector<4x256xf32> to vector<4x128xf32>
    %c0_6 = arith.constant 0 : index
    %c0_7 = arith.constant 0 : index
    %c0_8 = arith.constant 0 : index
    %8 = vector.load %arg4[%c0_6, %c0_7, %c0_8] : memref<4x18x4xf32, #tpu.memory_space<vmem>>, vector<1x18x4xf32>
    %9 = vector.shape_cast %8 : vector<1x18x4xf32> to vector<18x4xf32>
    %cst_9 = arith.constant dense<0.000000e+00> : vector<18x128xf32>
    %10 = tpu.matmul %9, %7, %cst_9 {dimension_numbers = #tpu.dot_dimension_numbers<[1], [0], [0], [1], [0, 0, 1, 1], [], []>} : vector<18x4xf32>, vector<4x128xf32>, vector<18x128xf32> -> vector<18x128xf32>
    %11 = arith.addf %5, %10 : vector<18x128xf32>
    %c0_10 = arith.constant 0 : index
    %c0_11 = arith.constant 0 : index
    %c0_12 = arith.constant 0 : index
    %12 = vector.load %arg5[%c0_10, %c0_11, %c0_12] : memref<4x16x4xf32, #tpu.memory_space<vmem>>, vector<1x16x4xf32>
    %13 = vector.shape_cast %12 : vector<1x16x4xf32> to vector<16x4xf32>
    %cst_13 = arith.constant dense<0.000000e+00> : vector<16x128xf32>
    %14 = tpu.matmul %13, %7, %cst_13 {dimension_numbers = #tpu.dot_dimension_numbers<[1], [0], [0], [1], [0, 0, 1, 1], [], []>} : vector<16x4xf32>, vector<4x128xf32>, vector<16x128xf32> -> vector<16x128xf32>
    %15 = arith.addf %6, %14 : vector<16x128xf32>
    %16 = vector.extract_strided_slice %4 {offsets = [0, 1], sizes = [4, 128], strides = [1, 1]} : vector<4x256xf32> to vector<4x128xf32>
    %c1 = arith.constant 1 : index
    %c0_14 = arith.constant 0 : index
    %c0_15 = arith.constant 0 : index
    %17 = vector.load %arg4[%c1, %c0_14, %c0_15] : memref<4x18x4xf32, #tpu.memory_space<vmem>>, vector<1x18x4xf32>
    %18 = vector.shape_cast %17 : vector<1x18x4xf32> to vector<18x4xf32>
    %cst_16 = arith.constant dense<0.000000e+00> : vector<18x128xf32>
    %19 = tpu.matmul %18, %16, %cst_16 {dimension_numbers = #tpu.dot_dimension_numbers<[1], [0], [0], [1], [0, 0, 1, 1], [], []>} : vector<18x4xf32>, vector<4x128xf32>, vector<18x128xf32> -> vector<18x128xf32>
    %20 = arith.addf %11, %19 : vector<18x128xf32>
    %c1_17 = arith.constant 1 : index
    %c0_18 = arith.constant 0 : index
    %c0_19 = arith.constant 0 : index
    %21 = vector.load %arg5[%c1_17, %c0_18, %c0_19] : memref<4x16x4xf32, #tpu.memory_space<vmem>>, vector<1x16x4xf32>
    %22 = vector.shape_cast %21 : vector<1x16x4xf32> to vector<16x4xf32>
    %cst_20 = arith.constant dense<0.000000e+00> : vector<16x128xf32>
    %23 = tpu.matmul %22, %16, %cst_20 {dimension_numbers = #tpu.dot_dimension_numbers<[1], [0], [0], [1], [0, 0, 1, 1], [], []>} : vector<16x4xf32>, vector<4x128xf32>, vector<16x128xf32> -> vector<16x128xf32>
    %24 = arith.addf %15, %23 : vector<16x128xf32>
    %25 = vector.extract_strided_slice %4 {offsets = [0, 2], sizes = [4, 128], strides = [1, 1]} : vector<4x256xf32> to vector<4x128xf32>
    %c2 = arith.constant 2 : index
    %c0_21 = arith.constant 0 : index
    %c0_22 = arith.constant 0 : index
    %26 = vector.load %arg4[%c2, %c0_21, %c0_22] : memref<4x18x4xf32, #tpu.memory_space<vmem>>, vector<1x18x4xf32>
    %27 = vector.shape_cast %26 : vector<1x18x4xf32> to vector<18x4xf32>
    %cst_23 = arith.constant dense<0.000000e+00> : vector<18x128xf32>
    %28 = tpu.matmul %27, %25, %cst_23 {dimension_numbers = #tpu.dot_dimension_numbers<[1], [0], [0], [1], [0, 0, 1, 1], [], []>} : vector<18x4xf32>, vector<4x128xf32>, vector<18x128xf32> -> vector<18x128xf32>
    %29 = arith.addf %20, %28 : vector<18x128xf32>
    %c2_24 = arith.constant 2 : index
    %c0_25 = arith.constant 0 : index
    %c0_26 = arith.constant 0 : index
    %30 = vector.load %arg5[%c2_24, %c0_25, %c0_26] : memref<4x16x4xf32, #tpu.memory_space<vmem>>, vector<1x16x4xf32>
    %31 = vector.shape_cast %30 : vector<1x16x4xf32> to vector<16x4xf32>
    %cst_27 = arith.constant dense<0.000000e+00> : vector<16x128xf32>
    %32 = tpu.matmul %31, %25, %cst_27 {dimension_numbers = #tpu.dot_dimension_numbers<[1], [0], [0], [1], [0, 0, 1, 1], [], []>} : vector<16x4xf32>, vector<4x128xf32>, vector<16x128xf32> -> vector<16x128xf32>
    %33 = arith.addf %24, %32 : vector<16x128xf32>
    %34 = vector.extract_strided_slice %4 {offsets = [0, 3], sizes = [4, 128], strides = [1, 1]} : vector<4x256xf32> to vector<4x128xf32>
    %c3 = arith.constant 3 : index
    %c0_28 = arith.constant 0 : index
    %c0_29 = arith.constant 0 : index
    %35 = vector.load %arg4[%c3, %c0_28, %c0_29] : memref<4x18x4xf32, #tpu.memory_space<vmem>>, vector<1x18x4xf32>
    %36 = vector.shape_cast %35 : vector<1x18x4xf32> to vector<18x4xf32>
    %cst_30 = arith.constant dense<0.000000e+00> : vector<18x128xf32>
    %37 = tpu.matmul %36, %34, %cst_30 {dimension_numbers = #tpu.dot_dimension_numbers<[1], [0], [0], [1], [0, 0, 1, 1], [], []>} : vector<18x4xf32>, vector<4x128xf32>, vector<18x128xf32> -> vector<18x128xf32>
    %38 = arith.addf %29, %37 : vector<18x128xf32>
    %c3_31 = arith.constant 3 : index
    %c0_32 = arith.constant 0 : index
    %c0_33 = arith.constant 0 : index
    %39 = vector.load %arg5[%c3_31, %c0_32, %c0_33] : memref<4x16x4xf32, #tpu.memory_space<vmem>>, vector<1x16x4xf32>
    %40 = vector.shape_cast %39 : vector<1x16x4xf32> to vector<16x4xf32>
    %cst_34 = arith.constant dense<0.000000e+00> : vector<16x128xf32>
    %41 = tpu.matmul %40, %34, %cst_34 {dimension_numbers = #tpu.dot_dimension_numbers<[1], [0], [0], [1], [0, 0, 1, 1], [], []>} : vector<16x4xf32>, vector<4x128xf32>, vector<16x128xf32> -> vector<16x128xf32>
    %42 = arith.addf %33, %41 : vector<16x128xf32>
    %c0_35 = arith.constant 0 : index
    %c0_36 = arith.constant 0 : index
    %c0_37 = arith.constant 0 : index
    %43 = vector.load %arg6[%c0_35, %c0_36, %c0_37] : memref<1x18x128xf32, #tpu.memory_space<vmem>>, vector<1x18x128xf32>
    %44 = vector.shape_cast %43 : vector<1x18x128xf32> to vector<18x128xf32>
    %45 = vector.shape_cast %38 : vector<18x128xf32> to vector<1x18x128xf32>
    tpu.vector_store %arg6[%c0_35, %c0_36, %c0_37], %45 {strides = array<i32>} : memref<1x18x128xf32, #tpu.memory_space<vmem>>, vector<1x18x128xf32>,
    %c0_38 = arith.constant 0 : index
    %c0_39 = arith.constant 0 : index
    %c0_40 = arith.constant 0 : index
    %46 = vector.load %arg7[%c0_38, %c0_39, %c0_40] : memref<1x16x128xf32, #tpu.memory_space<vmem>>, vector<1x16x128xf32>
    %47 = vector.shape_cast %46 : vector<1x16x128xf32> to vector<16x128xf32>
    %48 = vector.shape_cast %42 : vector<16x128xf32> to vector<1x16x128xf32>
    tpu.vector_store %arg7[%c0_38, %c0_39, %c0_40], %48 {strides = array<i32>} : memref<1x16x128xf32, #tpu.memory_space<vmem>>, vector<1x16x128xf32>,
    return
  }
  func.func @transform_0(%arg0: i32, %arg1: i32) -> (i32, i32, i32) {
    %c0_i32 = arith.constant 0 : i32
    %c0_i32_0 = arith.constant 0 : i32
    return %arg0, %c0_i32, %arg1 : i32, i32, i32
  }
  func.func @transform_1(%arg0: i32, %arg1: i32) -> (i32, i32, i32) {
    %c1_i32 = arith.constant 1 : i32
    %0 = arith.addi %arg1, %c1_i32 : i32
    %c1_i32_0 = arith.constant 1 : i32
    %1 = arith.muli %0, %c1_i32_0 : i32
    %c0_i32 = arith.constant 0 : i32
    %c0_i32_1 = arith.constant 0 : i32
    return %arg0, %c0_i32, %1 : i32, i32, i32
  }
  func.func @transform_2(%arg0: i32, %arg1: i32) -> (i32, i32, i32) {
    %c0_i32 = arith.constant 0 : i32
    %c0_i32_0 = arith.constant 0 : i32
    %c0_i32_1 = arith.constant 0 : i32
    %c0_i32_2 = arith.constant 0 : i32
    return %c0_i32, %c0_i32_0, %c0_i32_1 : i32, i32, i32
  }
  func.func @transform_3(%arg0: i32, %arg1: i32) -> (i32, i32, i32) {
    %c0_i32 = arith.constant 0 : i32
    %c0_i32_0 = arith.constant 0 : i32
    %c0_i32_1 = arith.constant 0 : i32
    %c0_i32_2 = arith.constant 0 : i32
    return %c0_i32, %c0_i32_0, %c0_i32_1 : i32, i32, i32
  }
  func.func @transform_4(%arg0: i32, %arg1: i32) -> (i32, i32, i32) {
    %c0_i32 = arith.constant 0 : i32
    %c0_i32_0 = arith.constant 0 : i32
    return %arg0, %c0_i32, %arg1 : i32, i32, i32
  }
  func.func @transform_5(%arg0: i32, %arg1: i32) -> (i32, i32, i32) {
    %c0_i32 = arith.constant 0 : i32
    %c0_i32_0 = arith.constant 0 : i32
    return %arg0, %c0_i32, %arg1 : i32, i32, i32
  }
}

</mosaic_0001>

<bundles_post_ra>
// kernel: tasnet_base_forward.1
= control target key start
LH: loop header
LB: loop body
LE: loop exit
PB: predicated region body
PF: predicated region fallthrough
CT: control target
= control target key end

     0   :  { %s1482_s18 = smov 0   ;;  %s1484_s19 = smov 0   ;;  %s1657_s0 = inlined_call_operand.vmem [shape: f32[2,4,256], index: 0, kind: input, shape index: {}, may-alias: {0,1}]   ;;  %s1658_s1 = inlined_call_operand.vmem [shape: f32[2,4,256], index: 1, kind: input, shape index: {}, may-alias: {0,1}]   ;;  %s1659_s2 = inlined_call_operand.vmem [shape: f32[4,18,4], index: 2, kind: input, shape index: {}]   ;;  %s1660_s3 = inlined_call_operand.vmem [shape: f32[4,16,4], index: 3, kind: input, shape index: {}]   ;;  %s1661_s4 = inlined_call_operand.vmem [shape: f32[2,18,128], index: 4, kind: output, shape index: {0}]   ;;  %s1662_s5 = inlined_call_operand.vmem [shape: f32[2,16,128], index: 5, kind: output, shape index: {1}]  }
   0x1   :  { %s1486_s20 = smov 0  }
   0x2 LB: > { %s28_s21 = sadd.s32 1, %s1441_s19  ;;  %p1220_p0 = scmp.ge.s32.totalorder %s1445_s20, 1  ;;  %s1445_s20 = sphi %s1486_s20, %s16_s20   ;;  %s1441_s19 = sphi %s1484_s19, %s1664_s19   ;;  %s1437_s18 = sphi %s1482_s18, %s1663_s18  }
   0x3   : > { %p30_p1 = scmp.ge.s32.totalorder %s28_s21, 2  ;;  %p230_p2 = scmp.lt.s32.totalorder %s1445_s20, 3 }
   0x5   : > { %s1666_s21 = smov (%p30_p1, %s28_s21), 0  ;;  %p231_p3 = pnand %p1220_p0, %p230_p2 }
   0x6   : > { %p281_p4 = scmp.lt.s32.totalorder (!%p231_p3), %s1437_s18, 1  ;;  %v1447_v0 = vmov (!%p231_p3), 0.0   ;;  %vm1448_vm0 = vmmov (!%p231_p3), 0   ;;  %vm344_vm1 = vcmask (!%p231_p3), 1043456   ;;  %v317_v2 = vld [vmem:[%s1659_s2] sm:$0xff] (!%p231_p3)  ;;  %vm334_vm2 = vcmask (!%p231_p3), 31744  }
   0x7   : > { %234 = sbr.rel (%p231_p3) target bundleno = 397 (0x18d), region = 36  ;;  %1317 = vmatprep.subr.mxu0 (!%p231_p3), %v1447_v0  ;;  %1319 = vmatprep.mubr.msk.f32.mxu0 (!%p231_p3), %vm1448_vm0, %v1447_v0  ;;  %s1449_s7 = smov (!%p231_p3), 126   ;;  %v318_v4 = vld [vmem:[%s1659_s2 + $0x8] sm:$0xff] (!%p231_p3)  ;;  %vm691_vm3 = vcmask (!%p231_p3), 1031168   ;;  %vm332_vm4 = vcmask (!%p231_p3), 1039360   ;;  %v1228_v9 = vld [vmem:[%s1659_s2 + $0x18] sm:$0xff] (!%p231_p3) }
   0x8   : > { %1306 = vmatprep.subr.mxu1 (!%p231_p3), %v1447_v0  ;;  %1308 = vmatprep.mubr.msk.f32.mxu1 (!%p231_p3), %vm1448_vm0, %v1447_v0  ;;  %s1450_s8 = smov (!%p231_p3), 127   ;;  %s1451_s11 = smov (!%p231_p3), 125   ;;  %v1247_v12 = vld [vmem:[%s1659_s2 + $0x30] sm:$0xff] (!%p231_p3)  ;;  %vm881_vm5 = vcmask (!%p231_p3), 1022976   ;;  %v1229_v13 = vld [vmem:[%s1659_s2 + $0x20] sm:$0xff] (!%p231_p3)  ;;  %v1248_v16 = vld [vmem:[%s1659_s2 + $0x38] sm:$0xff] (!%p231_p3) }
   0x9   : > { %v1230_v18 = vld [vmem:[%s1659_s2 + $0x28] sm:$0x3] (!%p231_p3)  ;;  %v1249_v19 = vld [vmem:[%s1659_s2 + $0x40] sm:$0x3] (!%p231_p3)  ;;  %v319_v21 = vld [vmem:[%s1659_s2 + $0x10] sm:$0x3] (!%p231_p3) }
   0xa   : > { %v1259_v20 = vld [vmem:[%s1659_s2 + $0x48] sm:$0xff] (!%p231_p3)  ;;  %v1260_v22 = vld [vmem:[%s1659_s2 + $0x50] sm:$0xff] (!%p231_p3)  ;;  %v1240_v24 = vld [vmem:[%s1660_s3 + $0x18] sm:$0xff] (!%p231_p3) }
   0xb   : > { %v1239_v23 = vld [vmem:[%s1660_s3 + $0x10] sm:$0xff] (!%p231_p3)  ;;  %v1261_v25 = vld [vmem:[%s1659_s2 + $0x58] sm:$0x3] (!%p231_p3)  ;;  %v320_v26 = vld [vmem:[%s1660_s3] sm:$0xff] (!%p231_p3) }
   0xc   : > { %v321_v27 = vld [vmem:[%s1660_s3 + $0x8] sm:$0xff] (!%p231_p3)  ;;  %v1254_v28 = vld [vmem:[%s1660_s3 + $0x20] sm:$0xff] (!%p231_p3)  ;;  %v1266_v30 = vld [vmem:[%s1660_s3 + $0x30] sm:$0xff] (!%p231_p3) }
   0xd   : > { %v1255_v29 = vld [vmem:[%s1660_s3 + $0x28] sm:$0xff] (!%p231_p3)  ;;  %v1267_v31 = vld [vmem:[%s1660_s3 + $0x38] sm:$0xff] (!%p231_p3) }
   0xe   : > { %s1668_s18 = smov (!%p281_p4, %s1437_s18), 1 }
   0xf   : > { %s1273_s22 = sshll.u32 %s1668_s18, 3  ;;  %s1393_s6 = smul.u32 24, %s1668_s18 }
  0x10   : > { %s288_s25 = scalar_lea.vmem %s1657_s0, %s1273_s22  ;;  %s1275_s26 = sadd.s32 4, %s1273_s22 }
  0x11   : > { %v1512_v1 = vld [vmem:[%s288_s25] sm:$0xf]  ;;  %s297_s29 = scalar_lea.vmem %s1658_s1, %s1275_s26  ;;  %s306_s9 = scalar_lea.vmem %s1661_s4, %s1393_s6 }
  0x12   : > { %687 = vrot.lane.b32.xlu1 %v1512_v1, %s1449_s7  ;;  %328 = vrot.lane.b32.xlu0 %v1512_v1, %s1450_s8  ;;  %v316_v3 = vld [vmem:[%s297_s29] sm:$0xf]  ;;  %s1276_s10 = sshll.u32 %s1668_s18, 4 }
  0x13   : > { %1318 = vmatpush3.msk.msra.mxu0 %vm344_vm1, %v1512_v1  ;;  %s314_s13 = scalar_lea.vmem %s1662_s5, %s1276_s10 }
  0x14   : > { %1320 = vmatmul.mubr.msk.f32.vlgmr.msra.gmra.mrb[0].mxu0 %vm334_vm2, %v317_v2  ;;  %1338 = vmatprep.subr.mxu0 %v1447_v0 }
  0x15   : > { %1322 = vmatprep.mubr.msk.f32.mxu0 %vm1448_vm0, %v1447_v0 }
  0x16   : > { %689 = vrot.lane.b32.xlu1 %v316_v3, %s1449_s7  ;;  %330 = vrot.lane.b32.xlu0 %v316_v3, %s1450_s8 }
  0x18   : > { %1323 = vmatmul.mubr.msk.f32.gmra.mrb[2].mxu0 %vm334_vm2, %v318_v4 }
  0x19   : > { %1340 = vmatprep.mubr.msk.f32.mxu0 %vm1448_vm0, %v1447_v0 }
  0x1a   : > { %879 = vrot.lane.b32.xlu1 %v316_v3, %s1451_s11  ;;  %877 = vrot.lane.b32.xlu0 %v1512_v1, %s1451_s11 }
  0x84   : > { %v688_v5 = vpop.permute.xlu1 %687  ;;  %v329_v6 = vpop.permute.xlu0 %328 }
  0x88   : > { %v690_v7 = vpop.permute.xlu1 %689  ;;  %v331_v8 = vpop.permute.xlu0 %330 }
  0x89   : > { %v692_v10 = vsel %vm691_vm3, %v688_v5, %v690_v7  ;;  %v333_v11 = vsel %vm332_vm4, %v329_v6, %v331_v8 }
  0x8a   : > { %1307 = vmatpush3.msk.msra.mxu1 %vm344_vm1, %v333_v11  ;;  %1339 = vmatpush3.msk.msra.mxu0 %vm344_vm1, %v692_v10 }
  0x8b   : > { %1309 = vmatmul.mubr.msk.f32.vlgmr.msra.gmra.mrb[0].mxu1 %vm334_vm2, %v1228_v9  ;;  %1370 = vmatprep.subr.mxu1 %v1447_v0 }
  0x8c   : > { %1341 = vmatmul.mubr.msk.f32.vlgmr.msra.gmra.mrb[0].mxu0 %vm334_vm2, %v1247_v12  ;;  %1371 = vmatpush3.msk.msra.mxu1 %vm344_vm1, %v1512_v1  ;;  %v880_v14 = vpop.permute.xlu1 %879  ;;  %v878_v15 = vpop.permute.xlu0 %877 }
  0x8d   : > { %1328 = vmatprep.subr.msk.mxu1 %vm344_vm1, %v333_v11  ;;  %1311 = vmatprep.mubr.msk.f32.mxu1 %vm1448_vm0, %v1447_v0  ;;  %v882_v17 = vsel %vm881_vm5, %v878_v15, %v880_v14 }
  0x8e   : > { %1343 = vmatprep.mubr.msk.f32.mxu0 %vm1448_vm0, %v1447_v0  ;;  %1354 = vmatprep.subr.mxu0 %v1447_v0 }
  0x8f   : > { %1312 = vmatmul.mubr.msk.f32.gmra.mrb[2].mxu1 %vm334_vm2, %v1229_v13  ;;  %1355 = vmatpush3.msk.msra.mxu0 %vm344_vm1, %v882_v17 }
  0x90   : > { %1344 = vmatmul.mubr.msk.f32.gmra.mrb[2].mxu0 %vm334_vm2, %v1248_v16  ;;  %1314 = vmatprep.mubr.msk.f32.mxu1 %vm1448_vm0, %v1447_v0 }
  0x91   : > { %1346 = vmatprep.mubr.msk.f32.mxu0 %vm1448_vm0, %v1447_v0 }
  0x93   : > { %1315 = vmatmul.mubr.msk.f32.gmra.mrb[4].mxu1 %vm334_vm2, %v1230_v18 }
  0x94   : > { %1347 = vmatmul.mubr.msk.f32.gmra.mrb[4].mxu0 %vm334_vm2, %v1249_v19  ;;  %1325 = vmatprep.mubr.msk.f32.mxu1 %vm1448_vm0, %v1447_v0 }
  0x95   : > { %1356 = vmatprep.mubr.msk.f32.mxu0 %vm1448_vm0, %v1447_v0 }
  0x98   : > { %1357 = vmatmul.mubr.msk.f32.vlgmr.msra.gmra.mrb[0].mxu0 %vm334_vm2, %v1259_v20 }
  0x99   : > { %1359 = vmatprep.mubr.msk.f32.mxu0 %vm1448_vm0, %v1447_v0 }
  0x9b   : > { %1326 = vmatmul.mubr.msk.f32.vlgmr.msra.gmra.mrb[4].mxu1 %vm334_vm2, %v319_v21 }
  0x9c   : > { %1329 = vmatpush3.msk.msra.mxu1 %vm344_vm1, %v333_v11  ;;  %1360 = vmatmul.mubr.msk.f32.gmra.mrb[2].mxu0 %vm334_vm2, %v1260_v22 }
  0x9d   : > { %1330 = vmatprep.mubr.msk.f32.mxu1 %vm334_vm2, %v1239_v23  ;;  %1333 = vmatprep.subr.msk.mxu1 %vm344_vm1, %v1512_v1 }
  0x9e   : > { %1362 = vmatprep.mubr.msk.f32.mxu0 %vm1448_vm0, %v1447_v0 }
  0x9f   : > { %1331 = vmatmul.mubr.msk.f32.vlgmr.msra.gmra.mrb[6].mxu1 %vm334_vm2, %v1240_v24 }
  0xa0   : > { %1334 = vmatpush3.msk.msra.mxu1 %vm344_vm1, %v1512_v1  ;;  %1363 = vmatmul.mubr.msk.f32.gmra.mrb[4].mxu0 %vm334_vm2, %v1261_v25 }
  0xa1   : > { %1349 = vmatprep.subr.msk.mxu1 %vm344_vm1, %v692_v10  ;;  %1335 = vmatprep.mubr.msk.f32.mxu1 %vm334_vm2, %v320_v26 }
  0xa7   : > { %1336 = vmatmul.mubr.msk.f32.vlgmr.msra.gmra.mrb[6].mxu1 %vm334_vm2, %v321_v27 }
  0xa8   : > { %1350 = vmatpush3.msk.msra.mxu1 %vm344_vm1, %v692_v10  ;;  %1351 = vmatprep.mubr.msk.f32.mxu1 %vm334_vm2, %v1254_v28 }
  0xa9   : > { %1365 = vmatprep.subr.msk.mxu1 %vm344_vm1, %v882_v17 }
  0xaf   : > { %1352 = vmatmul.mubr.msk.f32.vlgmr.msra.gmra.mrb[6].mxu1 %vm334_vm2, %v1255_v29 }
  0xb0   : > { %1366 = vmatpush3.msk.msra.mxu1 %vm344_vm1, %v882_v17  ;;  %1367 = vmatprep.mubr.msk.f32.mxu1 %vm334_vm2, %v1266_v30 }
  0xb7   : > { %1368 = vmatmul.mubr.msk.f32.vlgmr.msra.gmra.mrb[6].mxu1 %vm334_vm2, %v1267_v31 }
 0x15e   : > { %v413_v32 = vpop.f32.mrb[0].mxu1 }
 0x15f   : > { %v1310_v33 = vpop.f32.mrb[1].mxu1 }
 0x162   : > { %v418_v34 = vpop.f32.mrb[2].mxu1 }
 0x163   : > { %v1313_v35 = vpop.f32.mrb[3].mxu1 }
 0x16b   : > { %v960_v36 = vpop.f32.mrb[0].mxu0 }
 0x16c   : > { %v1372_v37 = vadd.f32 %v960_v36, %v413_v32  ;;  %v1358_v38 = vpop.f32.mrb[1].mxu0 }
 0x16e   : > { %1063 = vst [vmem:[%s306_s9] sm:$0xff] %v1372_v37  ;;  %v514_v39 = vpop.f32.mrb[4].mxu1 }
 0x16f   : > { %v965_v40 = vpop.f32.mrb[2].mxu0  ;;  %v1327_v41 = vpop.f32.mrb[5].mxu1 }
 0x170   : > { %v1373_v42 = vadd.f32 %v965_v40, %v418_v34  ;;  %v1361_v43 = vpop.f32.mrb[3].mxu0 }
 0x172   : > { %1064 = vst [vmem:[%s306_s9 + $0x8] sm:$0xff] %v1373_v42 }
 0x173   : > { %v970_v44 = vpop.f32.mrb[4].mxu0 }
 0x174   : > { %v1374_v45 = vadd.f32 %v970_v44, %v514_v39  ;;  %v1364_v46 = vpop.f32.mrb[5].mxu0 }
 0x176   : > { %1065 = vst [vmem:[%s306_s9 + $0x10] sm:$0x3] %v1374_v45 }
 0x18a   : > { %v1369_v47 = vpop.f32.mrb[6].mxu1 }
 0x18b   : > { %1067 = vst [vmem:[%s314_s13 + $0x8] sm:$0xff] %v1369_v47  ;;  %v1052_v48 = vpop.f32.mrb[7].mxu1 }
 0x18c   : > { %1066 = vst [vmem:[%s314_s13] sm:$0xff] %v1052_v48 }
 0x18d PF: > { %s16_s20 = sadd.s32 1, %s1445_s20   ;;  %s1663_s18 = smov %s1441_s19 }
 0x18e   : > { %p13_p5 = scmp.ge.s32.totalorder %s16_s20, 4   ;;  %s1664_s19 = smov %s1666_s21 }
 0x190   :  { %15 = sbr.rel (!%p13_p5) target bundleno = 2 (0x2), region = 87 }

</bundles_post_ra>
